<compile_context>
chip_gen: v6e
topology: v6e:2x2x1
jax: 0.10.0
libtpu: 0.0.40
codegen_flags: <defaults>
</compile_context>

<pallas_src>
import jax
import jax.numpy as jnp
from jax import lax
from jax.experimental import pallas as pl
from jax.experimental.pallas import tpu as pltpu


def _mf_weight_kernel(x_ref, sec_ref, lat_ref, bias_ref, o_ref):
    # h = x @ second_matrix.T  -> (TM, latent_dim); contract on in_features (last axes)
    h = lax.dot_general(
        x_ref[...], sec_ref[...],
        dimension_numbers=(((1,), (1,)), ((), ())),
        preferred_element_type=jnp.float32,
    )
    # out = h @ latent_weights.T -> (TM, out_features); contract on latent_dim (last axes)
    y = lax.dot_general(
        h.astype(lat_ref.dtype), lat_ref[...],
        dimension_numbers=(((1,), (1,)), ((), ())),
        preferred_element_type=jnp.float32,
    )
    o_ref[...] = (y + bias_ref[...].astype(jnp.float32)).astype(o_ref.dtype)


def mf_weight_forward(x, latent_weights, second_matrix, module_bias,
                      *, compute_dtype=None, block_m=512):
    """out = x @ (latent_weights @ second_matrix).T + module_bias, shape (..., out_features)."""
    *lead, in_features = x.shape
    out_features, latent_dim = latent_weights.shape
    assert second_matrix.shape == (latent_dim, in_features)
    assert module_bias.shape == (out_features,)

    out_dtype = x.dtype
    m = 1
    for d in lead:
        m *= d
    if m == 0:  # empty leading dims -> empty output, skip the kernel
        return jnp.zeros((*lead, out_features), dtype=out_dtype)

    cdt = jnp.dtype(compute_dtype) if compute_dtype is not None else jnp.dtype(x.dtype)
    x2d = x.reshape(m, in_features).astype(cdt)
    lat = latent_weights.astype(cdt)
    sec = second_matrix.astype(cdt)
    bias2d = module_bias.reshape(1, out_features).astype(cdt)

    # M tile: large enough to pipeline; multiple of 8 sublanes (16 for packed bf16).
    min_rows = 16 if cdt.itemsize == 2 else 8
    tm = min(block_m, ((m + min_rows - 1) // min_rows) * min_rows)
    n_tiles = pl.cdiv(m, tm)
    m_pad = n_tiles * tm
    if m_pad != m:
        x2d = jnp.pad(x2d, ((0, m_pad - m), (0, 0)))

    cost = pl.CostEstimate(
        flops=2 * m_pad * latent_dim * (in_features + out_features),
        transcendentals=0,
        bytes_accessed=(
            m_pad * in_features * cdt.itemsize                       # streamed x
            + m_pad * out_features * jnp.dtype(out_dtype).itemsize   # streamed out
            + latent_dim * (in_features + out_features) * cdt.itemsize  # resident weights
            + out_features * cdt.itemsize                            # bias
        ),
    )

    out2d = pl.pallas_call(
        _mf_weight_kernel,
        out_shape=jax.ShapeDtypeStruct((m_pad, out_features), out_dtype),
        grid=(n_tiles,),
        in_specs=[
            pl.BlockSpec((tm, in_features), lambda i: (i, 0)),           # x: streamed over M
            pl.BlockSpec((latent_dim, in_features), lambda i: (0, 0)),   # second_matrix: resident
            pl.BlockSpec((out_features, latent_dim), lambda i: (0, 0)),  # latent_weights: resident
            pl.BlockSpec((1, out_features), lambda i: (0, 0)),           # bias: resident
        ],
        out_specs=pl.BlockSpec((tm, out_features), lambda i: (i, 0)),
        compiler_params=pltpu.CompilerParams(
            dimension_semantics=("parallel",),  # shard M tiles across TCs on v7x
        ),
        cost_estimate=cost,
    )(x2d, sec, lat, bias2d)

    out2d = out2d[:m] if m_pad != m else out2d
    return out2d.reshape(*lead, out_features).astype(out_dtype)


if __name__ == "__main__":
    # Deterministic synthetic parameters / inputs (small shapes).
    batch, seq = 2, 8
    in_features, out_features, latent_dim = 32, 48, 8

    key = jax.random.PRNGKey(0)
    kx, kl, ks, kb = jax.random.split(key, 4)

    x = jax.random.normal(kx, (batch, seq, in_features), dtype=jnp.float32)
    latent_weights = jax.random.normal(kl, (out_features, latent_dim), dtype=jnp.float32) * 0.1
    second_matrix = jax.random.normal(ks, (latent_dim, in_features), dtype=jnp.float32) * 0.1
    module_bias = jax.random.normal(kb, (out_features,), dtype=jnp.float32) * 0.01

    # Reference in plain JAX (same math as the PyTorch forward).
    ref = x @ (latent_weights @ second_matrix).T + module_bias

    # f32 compute path (tight tolerance).
    out = jax.block_until_ready(
        mf_weight_forward(x, latent_weights, second_matrix, module_bias))
    assert out.shape == (batch, seq, out_features)
    assert jnp.allclose(out, ref, atol=1e-4, rtol=1e-4)

    # bf16 MXU path (v6e/v7x peak rate) with f32 accumulation -> looser tolerance.
    out_bf16 = jax.block_until_ready(
        mf_weight_forward(x, latent_weights, second_matrix, module_bias,
                          compute_dtype=jnp.bfloat16))
    assert out_bf16.shape == (batch, seq, out_features)
    assert jnp.allclose(out_bf16, ref, atol=5e-2, rtol=5e-2)

    print("KERNEL_OK")
</pallas_src>

<mosaic_0001>
module attributes {stable_mosaic.version = 11 : i64} {
  func.func @_mf_weight_kernel(%arg0: i32, %arg1: memref<16x32xf32, #tpu.memory_space<vmem>>, %arg2: memref<8x32xf32, #tpu.memory_space<vmem>>, %arg3: memref<48x8xf32, #tpu.memory_space<vmem>>, %arg4: memref<1x48xf32, #tpu.memory_space<vmem>>, %arg5: memref<16x48xf32, #tpu.memory_space<vmem>>) attributes {dimension_semantics = [#tpu.dimension_semantics<parallel>], iteration_bounds = array<i64: 1>, scalar_prefetch = 0 : i64, scratch_operands = 0 : i64, tpu.core_type = #tpu.core_type<tc>, window_params = [{transform_indices = @transform_0, window_bounds = array<i64: 16, 32>}, {pipeline_mode = #tpu.pipeline_mode<synchronous>, transform_indices = @transform_1, window_bounds = array<i64: 8, 32>}, {pipeline_mode = #tpu.pipeline_mode<synchronous>, transform_indices = @transform_2, window_bounds = array<i64: 48, 8>}, {pipeline_mode = #tpu.pipeline_mode<synchronous>, transform_indices = @transform_3, window_bounds = array<i64: 1, 48>}, {transform_indices = @transform_4, window_bounds = array<i64: 16, 48>}]} {
    %c0 = arith.constant 0 : index
    %c0_0 = arith.constant 0 : index
    %0 = vector.load %arg1[%c0, %c0_0] : memref<16x32xf32, #tpu.memory_space<vmem>>, vector<16x32xf32>
    %c0_1 = arith.constant 0 : index
    %c0_2 = arith.constant 0 : index
    %1 = vector.load %arg2[%c0_1, %c0_2] : memref<8x32xf32, #tpu.memory_space<vmem>>, vector<8x32xf32>
    %cst = arith.constant dense<0.000000e+00> : vector<16x8xf32>
    %2 = tpu.matmul %0, %1, %cst {dimension_numbers = #tpu.dot_dimension_numbers<[1], [1], [0], [0], [0, 0, 1, 0], [], []>} : vector<16x32xf32>, vector<8x32xf32>, vector<16x8xf32> -> vector<16x8xf32>
    %c0_3 = arith.constant 0 : index
    %c0_4 = arith.constant 0 : index
    %3 = vector.load %arg3[%c0_3, %c0_4] : memref<48x8xf32, #tpu.memory_space<vmem>>, vector<48x8xf32>
    %cst_5 = arith.constant dense<0.000000e+00> : vector<16x48xf32>
    %4 = tpu.matmul %2, %3, %cst_5 {dimension_numbers = #tpu.dot_dimension_numbers<[1], [1], [0], [0], [0, 0, 1, 0], [], []>} : vector<16x8xf32>, vector<48x8xf32>, vector<16x48xf32> -> vector<16x48xf32>
    %c0_6 = arith.constant 0 : index
    %c0_7 = arith.constant 0 : index
    %5 = vector.load %arg4[%c0_6, %c0_7] : memref<1x48xf32, #tpu.memory_space<vmem>>, vector<1x48xf32>
    %6 = vector.broadcast %5 : vector<1x48xf32> to vector<16x48xf32>
    %7 = arith.addf %4, %6 : vector<16x48xf32>
    %c0_8 = arith.constant 0 : index
    %c0_9 = arith.constant 0 : index
    %8 = vector.load %arg5[%c0_8, %c0_9] : memref<16x48xf32, #tpu.memory_space<vmem>>, vector<16x48xf32>
    tpu.vector_store %arg5[%c0_8, %c0_9], %7 {strides = array<i32>} : memref<16x48xf32, #tpu.memory_space<vmem>>, vector<16x48xf32>,
    return
  }
  func.func @transform_0(%arg0: i32) -> (i32, i32) {
    %c0_i32 = arith.constant 0 : i32
    %c0_i32_0 = arith.constant 0 : i32
    return %arg0, %c0_i32 : i32, i32
  }
  func.func @transform_1(%arg0: i32) -> (i32, i32) {
    %c0_i32 = arith.constant 0 : i32
    %c0_i32_0 = arith.constant 0 : i32
    %c0_i32_1 = arith.constant 0 : i32
    return %c0_i32, %c0_i32_0 : i32, i32
  }
  func.func @transform_2(%arg0: i32) -> (i32, i32) {
    %c0_i32 = arith.constant 0 : i32
    %c0_i32_0 = arith.constant 0 : i32
    %c0_i32_1 = arith.constant 0 : i32
    return %c0_i32, %c0_i32_0 : i32, i32
  }
  func.func @transform_3(%arg0: i32) -> (i32, i32) {
    %c0_i32 = arith.constant 0 : i32
    %c0_i32_0 = arith.constant 0 : i32
    %c0_i32_1 = arith.constant 0 : i32
    return %c0_i32, %c0_i32_0 : i32, i32
  }
  func.func @transform_4(%arg0: i32) -> (i32, i32) {
    %c0_i32 = arith.constant 0 : i32
    %c0_i32_0 = arith.constant 0 : i32
    return %arg0, %c0_i32 : i32, i32
  }
}

</mosaic_0001>

<bundles_post_ra>
// kernel: tpu_custom_call.1
= control target key start
LH: loop header
LB: loop body
LE: loop exit
PB: predicated region body
PF: predicated region fallthrough
CT: control target
= control target key end

     0   :  { %vm21_vm0 = vcmask 261120   ;;  %vm119_vm1 = vcmask 64512   ;;  %s381_s0 = inlined_call_operand.vmem [shape: f32[16,32], index: 0, kind: input, shape index: {}]   ;;  %s382_s1 = inlined_call_operand.vmem [shape: f32[8,32], index: 1, kind: input, shape index: {}]   ;;  %s383_s2 = inlined_call_operand.vmem [shape: f32[48,8], index: 2, kind: input, shape index: {}]   ;;  %s384_s3 = inlined_call_operand.vmem [shape: f32[1,48], index: 3, kind: input, shape index: {}]   ;;  %s385_s4 = inlined_call_operand.hbm [shape: f32[16,48], index: 4, kind: output, shape index: {}]  }
   0x1   :  { %v20_v0 = vld [vmem:[%s382_s1] sm:$0xff]  ;;  %v111_v2 = vld [vmem:[%s383_s2 + $0x28] sm:$0xff] }
   0x2   :  { %v18_v1 = vld [vmem:[%s381_s0] sm:$0xff]  ;;  %261 = vmatprep.subr.msk.mxu0 %vm21_vm0, %v20_v0  ;;  %v19_v4 = vld [vmem:[%s381_s0 + $0x8] sm:$0xff]  ;;  %266 = vmatprep.subr.msk.mxu1 %vm119_vm1, %v111_v2 }
   0x3   :  { %263 = vmatprep.mubr.msk.f32.mxu0 %vm21_vm0, %v18_v1  ;;  %v110_v3 = vld [vmem:[%s383_s2 + $0x20] sm:$0xff]  ;;  %262 = vmatpush3.xpose.msk.msra.mxu0 %vm21_vm0, %v20_v0 }
   0x4   :  { %9 = vsyncpa [#allocation3], 0  ;;  %267 = vmatpush3.xpose.msk.msra.mxu1 %vm119_vm1, %v111_v2  ;;  %v109_v5 = vld [vmem:[%s383_s2 + $0x18] sm:$0xff]  ;;  %v108_v6 = vld [vmem:[%s383_s2 + $0x10] sm:$0xff]  ;;  %s306_s7 = smov [#allocation2]   ;;  %vm219_vm2 = vcmask 392192  }
   0x5   :  { %268 = vmatprep.subr.msk.mxu1 %vm119_vm1, %v110_v3  ;;  %v107_v7 = vld [vmem:[%s383_s2 + $0x8] sm:$0xff]  ;;  %v106_v8 = vld [vmem:[%s383_s2] sm:$0xff]  ;;  %s227_s8 = sshll.u32 %s306_s7, 4  ;;  %s228_s8 = int_to_ptr.vmem [resolvable:$true] %s227_s8 }
   0x6   :  { %264 = vmatmul.mubr.msk.f32.vlgmr.msra.gmra.mxu0 %vm21_vm0, %v19_v4  ;;  %v241_v11 = vld [vmem:[%s384_s3] ss:$0 sm:$0xff]  ;;  %s284_s2 = scalar_lea.vmem %s228_s8, 256  ;;  %p289_p1 = scmp.lt.s32.totalorder %s228_s8, %s228_s8 }
   0x7   :  { %p285_p0 = scmp.ne.s32.totalorder %s228_s8, %s284_s2  ;;  %p290_p2 = scmp.lt.s32.totalorder %s284_s2, %s284_s2 }
   0x8   :  { %269 = vmatpush3.xpose.msk.msra.mxu1 %vm119_vm1, %v110_v3 }
   0x9   :  { %270 = vmatprep.subr.msk.mxu1 %vm119_vm1, %v109_v5  ;;  %p291_p3 = por %p290_p2, %p289_p1 }
   0xb   :  { %p292_p4 = pnand %p291_p3, %p285_p0 }
   0xc   :  { %271 = vmatpush3.xpose.msk.msra.mxu1 %vm119_vm1, %v109_v5 }
   0xd   :  { %272 = vmatprep.subr.msk.mxu1 %vm119_vm1, %v108_v6 }
  0x10   :  { %273 = vmatpush3.xpose.msk.msra.mxu1 %vm119_vm1, %v108_v6 }
  0x11   :  { %274 = vmatprep.subr.msk.mxu1 %vm119_vm1, %v107_v7 }
  0x14   :  { %275 = vmatpush3.xpose.msk.msra.mxu1 %vm119_vm1, %v107_v7 }
  0x15   :  { %276 = vmatprep.subr.msk.mxu1 %vm119_vm1, %v106_v8 }
  0x18   :  { %277 = vmatpush3.xpose.msk.msra.mxu1 %vm119_vm1, %v106_v8 }
  0xc6   :  { %v265_v9 = vpop.f32.mrf.mxu0 }
  0xc8   :  { %v97_v10 = vpop.f32.mrf.mxu0 }
  0xc9   :  { %278 = vmatprep.mubr.msk.f32.mxu1 %vm119_vm1, %v97_v10 }
  0xca   :  { %279 = vmatmul.mubr.msk.f32.vlgmr.msra.gmra.mxu1 %vm119_vm1, %v265_v9 }
 0x18a   :  { %v280_v12 = vpop.f32.mrf.mxu1 }
 0x18b   :  { %v216_v13 = vadd.f32 %v280_v12, %v241_v11 }
 0x18c   :  { %v210_v14 = vpop.f32.mrf.mxu1 }
 0x18d   :  { %221 = vst.msk [vmem:[#allocation2 + $0x8] sm:$0xff] %vm219_vm2, %v216_v13  ;;  %v211_v15 = vadd.f32 %v241_v11, %v210_v14 }
 0x18f   :  { %220 = vst.msk [vmem:[#allocation2] sm:$0xff] %vm219_vm2, %v211_v15 }
 0x190   :  { %295 = shalt.err (!%p292_p4)
}
 0x191   :  { %s307_s9 = smov 128   ;;  %s308_s10 = smov 8  }
 0x192   :  { %233 = dma.vmem_to_hbm [thread:$0]  %s228_s8, 256, %s385_s4, [#allocation3], %s307_s9, %s307_s9, %s308_s10  }
 0x193   :  { %304 = dma.done.wait [#allocation3], 256  }
 0x194   :  { %305 = vsyncadd [#allocation3], 4294967040 }
 0x195   :  { %237 = vsyncpa [#allocation3], 1 }

</bundles_post_ra>
